<compile_context>
chip_gen: v7x
topology: tpu7x:2x2x1
jax: 0.10.0
libtpu: 0.0.40
codegen_flags: <defaults>
</compile_context>

<pallas_src>
import math
import functools

import jax
import jax.numpy as jnp
from jax.experimental import pallas as pl
from jax.experimental.pallas import tpu as pltpu


_EPS = 1e-5


# --------------------------- generation-aware sizing ---------------------------

def _vmem_limit_bytes():
    """~3/4 of physical VMEM (≈96 MiB on v5e/v6e, ≈48 MiB on v7x)."""
    cap = 64 * 1024 * 1024
    try:
        info = pltpu.get_tpu_info()
        cap = int(getattr(info, "vmem_capacity_bytes", cap))
    except Exception:
        pass
    return max(32 * 1024 * 1024, min((cap * 3) // 4, 112 * 1024 * 1024))


_VMEM_LIMIT = _vmem_limit_bytes()


def _pick_tile(d, candidates):
    """Largest candidate that divides d; small dims fall back to d itself;
    otherwise the largest divisor of d not exceeding the biggest candidate."""
    for t in candidates:
        if d >= t and d % t == 0:
            return t
    if d <= min(candidates):
        return d
    for t in range(min(d, max(candidates)), 0, -1):
        if d % t == 0:
            return t
    return d


def _ff_tile(d_ff, s, h, budget):
    """Largest MLP hidden tile whose per-step working set fits the budget
    (bigger on 128-MiB v5e/v6e, tighter on 64-MiB v7x)."""
    resident = s * h * (4 + 4 + 2 + 4)            # x block + out block + bf16 h1 + f32 acc
    for t in (2048, 1024, 512, 384, 256, 128):
        if d_ff % t:
            continue
        step = 2 * (2 * h * t * 2) + s * t * 4    # dbl-buffered bf16 fc1/fc2 tiles + f32 hidden
        if resident + step <= budget:
            return t
    return _pick_tile(d_ff, (512, 384, 256, 128))


def _vocab_tile(v, rows, h, budget):
    """Lane-dense vocab tile sized so dbl-buffered bf16 output + embT tiles fit."""
    for t in (4096, 2048, 1024, 512, 256, 128):
        if v % t:
            continue
        step = 2 * (rows * t * 2) + 2 * (h * t * 2) + rows * h * 2
        if step <= budget:
            return t
    return _pick_tile(v, (512, 256, 128))


# ----------------------------- in-kernel math helpers -----------------------------

def _erf(x):
    # Abramowitz & Stegun 7.1.26 rational approximation (|err| < 1.5e-7):
    # torch's exact (erf-based) GELU at float32 precision, using only exp.
    a1, a2, a3, a4, a5 = (0.254829592, -0.284496736, 1.421413741,
                          -1.453152027, 1.061405429)
    p = 0.3275911
    sgn = jnp.where(x >= 0.0, 1.0, -1.0)
    ax = jnp.abs(x)
    t = 1.0 / (1.0 + p * ax)
    poly = ((((a5 * t + a4) * t + a3) * t + a2) * t + a1) * t
    return sgn * (1.0 - poly * jnp.exp(-ax * ax))


def _gelu_exact(x):
    return 0.5 * x * (1.0 + _erf(x * (1.0 / math.sqrt(2.0))))


def _layernorm(x, g, b, eps):
    mu = jnp.mean(x, axis=-1, keepdims=True)
    var = jnp.mean((x - mu) ** 2, axis=-1, keepdims=True)
    return (x - mu) * jax.lax.rsqrt(var + eps) * g + b


# ----------------------------- Pallas kernels -----------------------------

def _attn_ln1_kernel(x_ref, wqkv_ref, bqkv_ref, wo_ref, bo_ref, g1_ref, b1_ref,
                     o_ref, acc_ref, *, eps):
    """Grid (batch, heads). Per-head attention accumulated over heads."""
    n = pl.program_id(1)
    nh = pl.num_programs(1)

    @pl.when(n == 0)
    def _init():
        acc_ref[...] = jnp.zeros_like(acc_ref)

    x = x_ref[0]                                       # (s, h) f32
    s = x.shape[0]
    dh = wo_ref.shape[1]
    scale = 1.0 / math.sqrt(dh)

    xb = x.astype(jnp.bfloat16)
    # per-head QKV projection: (s, 3*dh), bf16 MXU operands, f32 accumulation
    qkv = jnp.dot(xb, wqkv_ref[0], preferred_element_type=jnp.float32) + bqkv_ref[0]
    q = qkv[:, :dh].astype(jnp.bfloat16)               # (s, dh)
    k = qkv[:, dh:2 * dh].astype(jnp.bfloat16)
    v = qkv[:, 2 * dh:].astype(jnp.bfloat16)

    # scores[i, j] = q[i, :] . k[j, :]
    scores = jax.lax.dot_general(q, k, (((1,), (1,)), ((), ())),
                                 preferred_element_type=jnp.float32) * scale
    row = jax.lax.broadcasted_iota(jnp.int32, (s, s), 0)
    col = jax.lax.broadcasted_iota(jnp.int32, (s, s), 1)
    scores = jnp.where(col <= row, scores, -jnp.inf)   # causal mask

    m = jnp.max(scores, axis=-1, keepdims=True)
    e = jnp.exp(scores - m)
    probs = e * pl.reciprocal(jnp.sum(e, axis=-1, keepdims=True), approx=True)

    att = jnp.dot(probs.astype(jnp.bfloat16), v,
                  preferred_element_type=jnp.float32)          # (s, dh)
    # per-head partial of W_O; summed over heads == concat(heads) @ W_O
    acc_ref[...] += jnp.dot(att.astype(jnp.bfloat16), wo_ref[0],
                            preferred_element_type=jnp.float32)  # (s, h)

    @pl.when(n == nh - 1)
    def _finalize():
        att_proj = acc_ref[...] + bo_ref[...]
        o_ref[0] = _layernorm(att_proj + x, g1_ref[...], b1_ref[...], eps)


def _mlp_ln2_kernel(h1_ref, wfc1_ref, bfc1_ref, wfc2_ref, bfc2_ref,
                    g2_ref, b2_ref, o_ref, h1b_ref, acc_ref, *, eps):
    """Grid (batch, ff-tiles). 4h hidden dim tiled with an f32 accumulator."""
    kk = pl.program_id(1)
    nk = pl.num_programs(1)

    @pl.when(kk == 0)
    def _init():
        h1b_ref[...] = h1_ref[0].astype(jnp.bfloat16)  # cast once, reused per tile
        acc_ref[...] = jnp.zeros_like(acc_ref)

    hid = jnp.dot(h1b_ref[...], wfc1_ref[...],
                  preferred_element_type=jnp.float32) + bfc1_ref[...]
    hid = _gelu_exact(hid)
    acc_ref[...] += jnp.dot(hid.astype(jnp.bfloat16), wfc2_ref[...],
                            preferred_element_type=jnp.float32)
    # TODO(synk): nn.Dropout layers are treated as identity (inference mode).

    @pl.when(kk == nk - 1)
    def _finalize():
        mlp = acc_ref[...] + bfc2_ref[...]
        o_ref[0] = _layernorm(mlp + h1_ref[0], g2_ref[...], b2_ref[...], eps)


def _final_ln_kernel(x_ref, g_ref, b_ref, o_ref, *, eps):
    o_ref[0] = _layernorm(x_ref[0], g_ref[...], b_ref[...], eps).astype(o_ref.dtype)


def _logits_kernel(y_ref, embT_ref, o_ref):
    # logits tile = LN(x) @ emb_w.T[:, tile]; bf16 operands, f32 accumulation
    o_ref[...] = jnp.dot(y_ref[...], embT_ref[...],
                         preferred_element_type=jnp.float32).astype(o_ref.dtype)


# ----------------------------- pallas_call wrappers -----------------------------

def _const_spec(a, n_grid):
    nd = a.ndim
    if n_grid == 1:
        return pl.BlockSpec(a.shape, lambda i, _n=nd: (0,) * _n)
    return pl.BlockSpec(a.shape, lambda i, k, _n=nd: (0,) * _n)


def attention_ln1(x, p, eps=_EPS):
    b, s, h = x.shape
    nh = p["w_qkv3"].shape[0]
    dh = p["w_o3"].shape[1]
    kernel = functools.partial(_attn_ln1_kernel, eps=eps)
    return pl.pallas_call(
        kernel,
        grid=(b, nh),
        in_specs=[
            pl.BlockSpec((1, s, h), lambda i, n: (i, 0, 0)),          # x
            pl.BlockSpec((1, h, 3 * dh), lambda i, n: (n, 0, 0)),     # w_qkv head n
            pl.BlockSpec((1, 1, 3 * dh), lambda i, n: (n, 0, 0)),     # b_qkv head n
            pl.BlockSpec((1, dh, h), lambda i, n: (n, 0, 0)),         # w_o head n
            _const_spec(p["b_o"], 2),
            _const_spec(p["ln1_g"], 2),
            _const_spec(p["ln1_b"], 2),
        ],
        out_specs=pl.BlockSpec((1, s, h), lambda i, n: (i, 0, 0)),
        out_shape=jax.ShapeDtypeStruct((b, s, h), jnp.float32),
        scratch_shapes=[pltpu.VMEM((s, h), jnp.float32)],             # head accumulator
        compiler_params=pltpu.CompilerParams(
            dimension_semantics=("parallel", "arbitrary"),
            vmem_limit_bytes=_VMEM_LIMIT),
    )(x, p["w_qkv3"], p["b_qkv3"], p["w_o3"], p["b_o"], p["ln1_g"], p["ln1_b"])


def mlp_ln2(h1, p, eps=_EPS):
    b, s, h = h1.shape
    d_ff = p["w_fc1"].shape[1]
    tff = _ff_tile(d_ff, s, h, _VMEM_LIMIT)
    nk = d_ff // tff
    kernel = functools.partial(_mlp_ln2_kernel, eps=eps)
    return pl.pallas_call(
        kernel,
        grid=(b, nk),
        in_specs=[
            pl.BlockSpec((1, s, h), lambda i, k: (i, 0, 0)),          # h1
            pl.BlockSpec((h, tff), lambda i, k: (0, k)),              # w_fc1 tile
            pl.BlockSpec((1, tff), lambda i, k: (0, k)),              # b_fc1 tile
            pl.BlockSpec((tff, h), lambda i, k: (k, 0)),              # w_fc2 tile
            _const_spec(p["b_fc2"], 2),
            _const_spec(p["ln2_g"], 2),
            _const_spec(p["ln2_b"], 2),
        ],
        out_specs=pl.BlockSpec((1, s, h), lambda i, k: (i, 0, 0)),
        out_shape=jax.ShapeDtypeStruct((b, s, h), jnp.float32),
        scratch_shapes=[pltpu.VMEM((s, h), jnp.bfloat16),             # h1 in bf16
                        pltpu.VMEM((s, h), jnp.float32)],             # MLP accumulator
        compiler_params=pltpu.CompilerParams(
            dimension_semantics=("parallel", "arbitrary"),
            vmem_limit_bytes=_VMEM_LIMIT),
    )(h1, p["w_fc1"], p["b_fc1"], p["w_fc2"], p["b_fc2"], p["ln2_g"], p["ln2_b"])


def final_logits(x, ln_g, ln_b, emb_wT, eps=_EPS):
    b, s, h = x.shape
    v = emb_wT.shape[1]

    # 1) final LayerNorm -> bf16 (tiny kernel, batch-parallel)
    y = pl.pallas_call(
        functools.partial(_final_ln_kernel, eps=eps),
        grid=(b,),
        in_specs=[pl.BlockSpec((1, s, h), lambda i: (i, 0, 0)),
                  _const_spec(ln_g, 1), _const_spec(ln_b, 1)],
        out_specs=pl.BlockSpec((1, s, h), lambda i: (i, 0, 0)),
        out_shape=jax.ShapeDtypeStruct((b, s, h), jnp.bfloat16),
        compiler_params=pltpu.CompilerParams(
            dimension_semantics=("parallel",),
            vmem_limit_bytes=_VMEM_LIMIT),
    )(x, ln_g, ln_b)

    # 2) tied-embedding projection: batch*seq folded into rows, vocab-only grid
    #    so the (h, V) embedding table streams from HBM exactly once; bf16 logits.
    rows = b * s
    y2 = y.reshape(rows, h)
    tv = _vocab_tile(v, rows, h, _VMEM_LIMIT)
    nv = v // tv
    logits = pl.pallas_call(
        _logits_kernel,
        grid=(nv,),
        in_specs=[pl.BlockSpec((rows, h), lambda j: (0, 0)),
                  pl.BlockSpec((h, tv), lambda j: (0, j))],
        out_specs=pl.BlockSpec((rows, tv), lambda j: (0, j)),
        out_shape=jax.ShapeDtypeStruct((rows, v), jnp.bfloat16),
        compiler_params=pltpu.CompilerParams(
            dimension_semantics=("parallel",),
            vmem_limit_bytes=_VMEM_LIMIT),
    )(y2, emb_wT)
    return logits.reshape(b, s, v)


# ----------------------------- model glue (plain JAX) -----------------------------

def positional_encoding(seq_len, d_model):
    D = d_model // 2
    pos = jnp.arange(seq_len, dtype=jnp.float32)
    j = jnp.arange(D, dtype=jnp.float32)
    inv = 1.0 / (10000.0 ** (2.0 * j / float(D)))
    angles = jnp.outer(pos, inv)                    # (seq, D)
    pe = jnp.zeros((seq_len, d_model), jnp.float32)
    pe = pe.at[:, 0::2].set(jnp.sin(angles))
    pe = pe.at[:, 1::2].set(jnp.cos(angles))
    return pe


def _prepare_layer(p, num_heads):
    """Reorganize torch-style weights into kernel-friendly, head-major bf16."""
    h = p["w_qkv"].shape[0]
    dh = h // num_heads
    w_qkv3 = (p["w_qkv"].reshape(h, 3, num_heads, dh)
              .transpose(2, 0, 1, 3)
              .reshape(num_heads, h, 3 * dh)
              .astype(jnp.bfloat16))                     # (nh, h, 3*dh)
    b_qkv3 = (p["b_qkv"].reshape(3, num_heads, dh)
              .transpose(1, 0, 2)
              .reshape(num_heads, 1, 3 * dh)
              .astype(jnp.float32))                      # (nh, 1, 3*dh)
    w_o3 = p["w_o"].reshape(num_heads, dh, h).astype(jnp.bfloat16)  # (nh, dh, h)
    return {
        "w_qkv3": w_qkv3, "b_qkv3": b_qkv3, "w_o3": w_o3, "b_o": p["b_o"],
        "ln1_g": p["ln1_g"], "ln1_b": p["ln1_b"],
        "ln2_g": p["ln2_g"], "ln2_b": p["ln2_b"],
        "w_fc1": p["w_fc1"].astype(jnp.bfloat16), "b_fc1": p["b_fc1"],
        "w_fc2": p["w_fc2"].astype(jnp.bfloat16), "b_fc2": p["b_fc2"],
    }


def decoder_transformer(tokens, emb_w, layers, ln_g, ln_b, num_heads):
    _, s = tokens.shape
    hidden = emb_w.shape[1]
    x = emb_w[tokens] + positional_encoding(s, hidden)[None]   # gather + pos add
    # embedding dropout: identity (inference mode)
    for p in layers:
        lp = _prepare_layer(p, num_heads)
        h1 = attention_ln1(x, lp)
        x = mlp_ln2(h1, lp)
    emb_wT = emb_w.T.astype(jnp.bfloat16)                      # (h, V) for the MXU
    return final_logits(x, ln_g, ln_b, emb_wT)


def init_params(key, num_layers, vocab, hidden):
    def norm(k, shape, scale=0.02):
        return scale * jax.random.normal(k, shape, dtype=jnp.float32)

    keys = jax.random.split(key, num_layers + 1)
    emb_w = norm(keys[0], (vocab, hidden))
    layers = []
    for l in range(num_layers):
        ks = jax.random.split(keys[1 + l], 8)
        layers.append({
            "w_qkv": norm(ks[0], (hidden, 3 * hidden)),
            "b_qkv": norm(ks[1], (1, 3 * hidden)),
            "w_o":   norm(ks[2], (hidden, hidden)),
            "b_o":   norm(ks[3], (1, hidden)),
            "ln1_g": jnp.ones((1, hidden), jnp.float32),
            "ln1_b": jnp.zeros((1, hidden), jnp.float32),
            "ln2_g": jnp.ones((1, hidden), jnp.float32),
            "ln2_b": jnp.zeros((1, hidden), jnp.float32),
            "w_fc1": norm(ks[4], (hidden, 4 * hidden)),
            "b_fc1": norm(ks[5], (1, 4 * hidden)),
            "w_fc2": norm(ks[6], (4 * hidden, hidden)),
            "b_fc2": norm(ks[7], (1, hidden)),
        })
    ln_g = jnp.ones((1, hidden), jnp.float32)
    ln_b = jnp.zeros((1, hidden), jnp.float32)
    return emb_w, layers, ln_g, ln_b


# ----------------------------- pure-JAX reference -----------------------------

def _ref_forward(tokens, emb_w, layers, ln_g, ln_b, num_heads):
    b, s = tokens.shape
    hidden = emb_w.shape[1]
    nh, dh = num_heads, hidden // num_heads
    eps = _EPS

    def ln(z, g, bb):
        mu = z.mean(-1, keepdims=True)
        var = ((z - mu) ** 2).mean(-1, keepdims=True)
        return (z - mu) / jnp.sqrt(var + eps) * g[0] + bb[0]

    x = emb_w[tokens] + positional_encoding(s, hidden)[None]
    mask = jnp.tril(jnp.ones((s, s), bool))
    for p in layers:
        qkv = x @ p["w_qkv"] + p["b_qkv"][0]
        Q, K, V = jnp.split(qkv, 3, axis=-1)
        Qh = Q.reshape(b, s, nh, dh).transpose(0, 2, 1, 3)
        Kh = K.reshape(b, s, nh, dh).transpose(0, 2, 1, 3)
        Vh = V.reshape(b, s, nh, dh).transpose(0, 2, 1, 3)
        scores = jnp.einsum("bnqd,bnkd->bnqk", Qh, Kh) / math.sqrt(dh)
        scores = jnp.where(mask, scores, -jnp.inf)
        probs = jax.nn.softmax(scores, axis=-1)
        att = jnp.einsum("bnqk,bnkd->bnqd", probs, Vh)
        att = att.transpose(0, 2, 1, 3).reshape(b, s, hidden)
        att = att @ p["w_o"] + p["b_o"][0]
        h1 = ln(att + x, p["ln1_g"], p["ln1_b"])
        hid = h1 @ p["w_fc1"] + p["b_fc1"][0]
        hid = 0.5 * hid * (1.0 + jax.scipy.special.erf(hid / math.sqrt(2.0)))
        mlp = hid @ p["w_fc2"] + p["b_fc2"][0]
        x = ln(mlp + h1, p["ln2_g"], p["ln2_b"])
    return ln(x, ln_g, ln_b) @ emb_w.T


# ----------------------------- main -----------------------------

if __name__ == "__main__":
    batch, seq = 2, 8
    num_layers, num_heads, vocab, hidden = 2, 4, 64, 32

    key = jax.random.PRNGKey(0)
    kp, kt = jax.random.split(key)
    emb_w, layers, ln_g, ln_b = init_params(kp, num_layers, vocab, hidden)
    tokens = jax.random.randint(kt, (batch, seq), 0, vocab, dtype=jnp.int32)

    logits = decoder_transformer(tokens, emb_w, layers, ln_g, ln_b, num_heads)
    logits = jax.block_until_ready(logits)
    assert logits.shape == (batch, seq, vocab), logits.shape

    ref = _ref_forward(tokens, emb_w, layers, ln_g, ln_b, num_heads)
    out = logits.astype(jnp.float32)
    max_err = float(jnp.max(jnp.abs(out - ref)))
    # bf16 matmul operands / bf16 logits (f32 accumulation) -> looser tolerance.
    assert jnp.allclose(out, ref, atol=5e-2, rtol=5e-2), max_err

    print("KERNEL_OK")
</pallas_src>

<mosaic_0001>
module attributes {stable_mosaic.version = 11 : i64} {
  func.func @_attn_ln1_kernel(%arg0: i32, %arg1: i32, %arg2: memref<1x8x32xf32, #tpu.memory_space<vmem>>, %arg3: memref<1x32x24xbf16, #tpu.memory_space<vmem>>, %arg4: memref<1x1x24xf32, #tpu.memory_space<vmem>>, %arg5: memref<1x8x32xbf16, #tpu.memory_space<vmem>>, %arg6: memref<1x32xf32, #tpu.memory_space<vmem>>, %arg7: memref<1x32xf32, #tpu.memory_space<vmem>>, %arg8: memref<1x32xf32, #tpu.memory_space<vmem>>, %arg9: memref<1x8x32xf32, #tpu.memory_space<vmem>>, %arg10: memref<8x32xf32, #tpu.memory_space<vmem>>) attributes {dimension_semantics = [#tpu.dimension_semantics<parallel>, #tpu.dimension_semantics<arbitrary>], iteration_bounds = array<i64: 2, 4>, scalar_prefetch = 0 : i64, scratch_operands = 1 : i64, tpu.core_type = #tpu.core_type<tc>, window_params = [{transform_indices = @transform_0, window_bounds = array<i64: 1, 8, 32>}, {transform_indices = @transform_1, window_bounds = array<i64: 1, 32, 24>}, {transform_indices = @transform_2, window_bounds = array<i64: 1, 1, 24>}, {transform_indices = @transform_3, window_bounds = array<i64: 1, 8, 32>}, {pipeline_mode = #tpu.pipeline_mode<synchronous>, transform_indices = @transform_4, window_bounds = array<i64: 1, 32>}, {pipeline_mode = #tpu.pipeline_mode<synchronous>, transform_indices = @transform_5, window_bounds = array<i64: 1, 32>}, {pipeline_mode = #tpu.pipeline_mode<synchronous>, transform_indices = @transform_6, window_bounds = array<i64: 1, 32>}, {transform_indices = @transform_7, window_bounds = array<i64: 1, 8, 32>}]} {
    %c0_i32 = arith.constant 0 : i32
    %0 = arith.cmpi eq, %arg1, %c0_i32 : i32
    %1 = arith.extui %0 : i1 to i32
    %c0_i32_0 = arith.constant 0 : i32
    %2 = arith.cmpi ne, %1, %c0_i32_0 : i32
    scf.if %2 {
      %cst_24 = arith.constant 0.000000e+00 : f32
      %49 = vector.broadcast %cst_24 : f32 to vector<8x32xf32>
      %c0_25 = arith.constant 0 : index
      %c0_26 = arith.constant 0 : index
      %50 = vector.load %arg10[%c0_25, %c0_26] : memref<8x32xf32, #tpu.memory_space<vmem>>, vector<8x32xf32>
      tpu.vector_store %arg10[%c0_25, %c0_26], %49 {strides = array<i32>} : memref<8x32xf32, #tpu.memory_space<vmem>>, vector<8x32xf32>,
    } else {
    }
    %c0 = arith.constant 0 : index
    %c0_1 = arith.constant 0 : index
    %c0_2 = arith.constant 0 : index
    %3 = vector.load %arg2[%c0, %c0_1, %c0_2] : memref<1x8x32xf32, #tpu.memory_space<vmem>>, vector<1x8x32xf32>
    %4 = vector.shape_cast %3 : vector<1x8x32xf32> to vector<8x32xf32>
    %5 = arith.truncf %4 : vector<8x32xf32> to vector<8x32xbf16>
    %c0_3 = arith.constant 0 : index
    %c0_4 = arith.constant 0 : index
    %c0_5 = arith.constant 0 : index
    %6 = vector.load %arg3[%c0_3, %c0_4, %c0_5] : memref<1x32x24xbf16, #tpu.memory_space<vmem>>, vector<1x32x24xbf16>
    %7 = vector.shape_cast %6 : vector<1x32x24xbf16> to vector<32x24xbf16>
    %cst = arith.constant dense<0.000000e+00> : vector<8x24xf32>
    %8 = tpu.matmul %5, %7, %cst {dimension_numbers = #tpu.dot_dimension_numbers<[1], [0], [0], [1], [0, 0, 1, 1], [], []>} : vector<8x32xbf16>, vector<32x24xbf16>, vector<8x24xf32> -> vector<8x24xf32>
    %c0_6 = arith.constant 0 : index
    %c0_7 = arith.constant 0 : index
    %c0_8 = arith.constant 0 : index
    %9 = vector.load %arg4[%c0_6, %c0_7, %c0_8] : memref<1x1x24xf32, #tpu.memory_space<vmem>>, vector<1x1x24xf32>
    %10 = vector.shape_cast %9 : vector<1x1x24xf32> to vector<1x24xf32>
    %11 = vector.broadcast %10 : vector<1x24xf32> to vector<8x24xf32>
    %12 = arith.addf %8, %11 : vector<8x24xf32>
    %13 = vector.extract_strided_slice %12 {offsets = [0, 0], sizes = [8, 8], strides = [1, 1]} : vector<8x24xf32> to vector<8x8xf32>
    %14 = arith.truncf %13 : vector<8x8xf32> to vector<8x8xbf16>
    %15 = vector.extract_strided_slice %12 {offsets = [0, 8], sizes = [8, 8], strides = [1, 1]} : vector<8x24xf32> to vector<8x8xf32>
    %16 = arith.truncf %15 : vector<8x8xf32> to vector<8x8xbf16>
    %17 = vector.extract_strided_slice %12 {offsets = [0, 16], sizes = [8, 8], strides = [1, 1]} : vector<8x24xf32> to vector<8x8xf32>
    %18 = arith.truncf %17 : vector<8x8xf32> to vector<8x8xbf16>
    %cst_9 = arith.constant dense<0.000000e+00> : vector<8x8xf32>
    %19 = tpu.matmul %14, %16, %cst_9 {dimension_numbers = #tpu.dot_dimension_numbers<[1], [1], [0], [0], [0, 0, 1, 0], [], []>} : vector<8x8xbf16>, vector<8x8xbf16>, vector<8x8xf32> -> vector<8x8xf32>
    %cst_10 = arith.constant 0.353553385 : f32
    %20 = vector.broadcast %cst_10 : f32 to vector<8x8xf32>
    %21 = arith.mulf %19, %20 : vector<8x8xf32>
    %22 = tpu.iota {dimensions = array<i32: 0>} : vector<8x8xi32>
    %23 = tpu.iota {dimensions = array<i32: 1>} : vector<8x8xi32>
    %24 = arith.cmpi sle, %23, %22 : vector<8x8xi32>
    %cst_11 = arith.constant 0xFF800000 : f32
    %25 = vector.broadcast %cst_11 : f32 to vector<8x8xf32>
    %26 = arith.select %24, %21, %25 : vector<8x8xi1>, vector<8x8xf32>
    %cst_12 = arith.constant dense<0xFF800000> : vector<8xf32>
    %27 = vector.multi_reduction <maximumf>, %26, %cst_12 [1] : vector<8x8xf32> to vector<8xf32>
    %28 = vector.shape_cast %27 : vector<8xf32> to vector<8x1xf32>
    %29 = vector.broadcast %28 : vector<8x1xf32> to vector<8x8xf32>
    %30 = arith.subf %26, %29 : vector<8x8xf32>
    %31 = math.exp %30 : vector<8x8xf32>
    %cst_13 = arith.constant dense<0.000000e+00> : vector<8xf32>
    %32 = vector.multi_reduction <add>, %31, %cst_13 [1] : vector<8x8xf32> to vector<8xf32>
    %33 = vector.shape_cast %32 : vector<8xf32> to vector<8x1xf32>
    %34 = tpu.reciprocal %33 {approx = true} : vector<8x1xf32> -> vector<8x1xf32>
    %35 = vector.broadcast %34 : vector<8x1xf32> to vector<8x8xf32>
    %36 = arith.mulf %31, %35 : vector<8x8xf32>
    %37 = arith.truncf %36 : vector<8x8xf32> to vector<8x8xbf16>
    %cst_14 = arith.constant dense<0.000000e+00> : vector<8x8xf32>
    %38 = tpu.matmul %37, %18, %cst_14 {dimension_numbers = #tpu.dot_dimension_numbers<[1], [0], [0], [1], [0, 0, 1, 1], [], []>} : vector<8x8xbf16>, vector<8x8xbf16>, vector<8x8xf32> -> vector<8x8xf32>
    %c0_15 = arith.constant 0 : index
    %c0_16 = arith.constant 0 : index
    %39 = vector.load %arg10[%c0_15, %c0_16] : memref<8x32xf32, #tpu.memory_space<vmem>>, vector<8x32xf32>
    %40 = arith.truncf %38 : vector<8x8xf32> to vector<8x8xbf16>
    %c0_17 = arith.constant 0 : index
    %c0_18 = arith.constant 0 : index
    %c0_19 = arith.constant 0 : index
    %41 = vector.load %arg5[%c0_17, %c0_18, %c0_19] : memref<1x8x32xbf16, #tpu.memory_space<vmem>>, vector<1x8x32xbf16>
    %42 = vector.shape_cast %41 : vector<1x8x32xbf16> to vector<8x32xbf16>
    %cst_20 = arith.constant dense<0.000000e+00> : vector<8x32xf32>
    %43 = tpu.matmul %40, %42, %cst_20 {dimension_numbers = #tpu.dot_dimension_numbers<[1], [0], [0], [1], [0, 0, 1, 1], [], []>} : vector<8x8xbf16>, vector<8x32xbf16>, vector<8x32xf32> -> vector<8x32xf32>
    %44 = arith.addf %39, %43 : vector<8x32xf32>
    %c0_21 = arith.constant 0 : index
    %c0_22 = arith.constant 0 : index
    %45 = vector.load %arg10[%c0_21, %c0_22] : memref<8x32xf32, #tpu.memory_space<vmem>>, vector<8x32xf32>
    tpu.vector_store %arg10[%c0_21, %c0_22], %44 {strides = array<i32>} : memref<8x32xf32, #tpu.memory_space<vmem>>, vector<8x32xf32>,
    %c3_i32 = arith.constant 3 : i32
    %46 = arith.cmpi eq, %arg1, %c3_i32 : i32
    %47 = arith.extui %46 : i1 to i32
    %c0_i32_23 = arith.constant 0 : i32
    %48 = arith.cmpi ne, %47, %c0_i32_23 : i32
    scf.if %48 {
      %c0_24 = arith.constant 0 : index
      %c0_25 = arith.constant 0 : index
      %49 = vector.load %arg10[%c0_24, %c0_25] : memref<8x32xf32, #tpu.memory_space<vmem>>, vector<8x32xf32>
      %c0_26 = arith.constant 0 : index
      %c0_27 = arith.constant 0 : index
      %50 = vector.load %arg6[%c0_26, %c0_27] : memref<1x32xf32, #tpu.memory_space<vmem>>, vector<1x32xf32>
      %51 = vector.broadcast %50 : vector<1x32xf32> to vector<8x32xf32>
      %52 = arith.addf %49, %51 : vector<8x32xf32>
      %53 = arith.addf %52, %4 : vector<8x32xf32>
      %c0_28 = arith.constant 0 : index
      %c0_29 = arith.constant 0 : index
      %54 = vector.load %arg7[%c0_28, %c0_29] : memref<1x32xf32, #tpu.memory_space<vmem>>, vector<1x32xf32>
      %c0_30 = arith.constant 0 : index
      %c0_31 = arith.constant 0 : index
      %55 = vector.load %arg8[%c0_30, %c0_31] : memref<1x32xf32, #tpu.memory_space<vmem>>, vector<1x32xf32>
      %cst_32 = arith.constant dense<0.000000e+00> : vector<8xf32>
      %56 = vector.multi_reduction <add>, %53, %cst_32 [1] : vector<8x32xf32> to vector<8xf32>
      %57 = vector.shape_cast %56 : vector<8xf32> to vector<8x1xf32>
      %cst_33 = arith.constant 3.200000e+01 : f32
      %58 = vector.broadcast %cst_33 : f32 to vector<8x1xf32>
      %59 = arith.divf %57, %58 : vector<8x1xf32>
      %60 = vector.broadcast %59 : vector<8x1xf32> to vector<8x32xf32>
      %61 = arith.subf %53, %60 : vector<8x32xf32>
      %62 = arith.mulf %61, %61 : vector<8x32xf32>
      %cst_34 = arith.constant dense<0.000000e+00> : vector<8xf32>
      %63 = vector.multi_reduction <add>, %62, %cst_34 [1] : vector<8x32xf32> to vector<8xf32>
      %64 = vector.shape_cast %63 : vector<8xf32> to vector<8x1xf32>
      %cst_35 = arith.constant 3.200000e+01 : f32
      %65 = vector.broadcast %cst_35 : f32 to vector<8x1xf32>
      %66 = arith.divf %64, %65 : vector<8x1xf32>
      %67 = vector.broadcast %59 : vector<8x1xf32> to vector<8x32xf32>
      %68 = arith.subf %53, %67 : vector<8x32xf32>
      %cst_36 = arith.constant 9.99999974E-6 : f32
      %69 = vector.broadcast %cst_36 : f32 to vector<8x1xf32>
      %70 = arith.addf %66, %69 : vector<8x1xf32>
      %71 = math.rsqrt %70 : vector<8x1xf32>
      %72 = vector.broadcast %71 : vector<8x1xf32> to vector<8x32xf32>
      %73 = arith.mulf %68, %72 : vector<8x32xf32>
      %74 = vector.broadcast %54 : vector<1x32xf32> to vector<8x32xf32>
      %75 = arith.mulf %73, %74 : vector<8x32xf32>
      %76 = vector.broadcast %55 : vector<1x32xf32> to vector<8x32xf32>
      %77 = arith.addf %75, %76 : vector<8x32xf32>
      %c0_37 = arith.constant 0 : index
      %c0_38 = arith.constant 0 : index
      %c0_39 = arith.constant 0 : index
      %78 = vector.load %arg9[%c0_37, %c0_38, %c0_39] : memref<1x8x32xf32, #tpu.memory_space<vmem>>, vector<1x8x32xf32>
      %79 = vector.shape_cast %78 : vector<1x8x32xf32> to vector<8x32xf32>
      %80 = vector.shape_cast %77 : vector<8x32xf32> to vector<1x8x32xf32>
      tpu.vector_store %arg9[%c0_37, %c0_38, %c0_39], %80 {strides = array<i32>} : memref<1x8x32xf32, #tpu.memory_space<vmem>>, vector<1x8x32xf32>,
    } else {
    }
    return
  }
  func.func @transform_0(%arg0: i32, %arg1: i32) -> (i32, i32, i32) {
    %c0_i32 = arith.constant 0 : i32
    %c0_i32_0 = arith.constant 0 : i32
    %c0_i32_1 = arith.constant 0 : i32
    return %arg0, %c0_i32, %c0_i32_0 : i32, i32, i32
  }
  func.func @transform_1(%arg0: i32, %arg1: i32) -> (i32, i32, i32) {
    %c0_i32 = arith.constant 0 : i32
    %c0_i32_0 = arith.constant 0 : i32
    %c0_i32_1 = arith.constant 0 : i32
    return %arg1, %c0_i32, %c0_i32_0 : i32, i32, i32
  }
  func.func @transform_2(%arg0: i32, %arg1: i32) -> (i32, i32, i32) {
    %c0_i32 = arith.constant 0 : i32
    %c0_i32_0 = arith.constant 0 : i32
    %c0_i32_1 = arith.constant 0 : i32
    return %arg1, %c0_i32, %c0_i32_0 : i32, i32, i32
  }
  func.func @transform_3(%arg0: i32, %arg1: i32) -> (i32, i32, i32) {
    %c0_i32 = arith.constant 0 : i32
    %c0_i32_0 = arith.constant 0 : i32
    %c0_i32_1 = arith.constant 0 : i32
    return %arg1, %c0_i32, %c0_i32_0 : i32, i32, i32
  }
  func.func @transform_4(%arg0: i32, %arg1: i32) -> (i32, i32) {
    %c0_i32 = arith.constant 0 : i32
    %c0_i32_0 = arith.constant 0 : i32
    %c0_i32_1 = arith.constant 0 : i32
    return %c0_i32, %c0_i32_0 : i32, i32
  }
  func.func @transform_5(%arg0: i32, %arg1: i32) -> (i32, i32) {
    %c0_i32 = arith.constant 0 : i32
    %c0_i32_0 = arith.constant 0 : i32
    %c0_i32_1 = arith.constant 0 : i32
    return %c0_i32, %c0_i32_0 : i32, i32
  }
  func.func @transform_6(%arg0: i32, %arg1: i32) -> (i32, i32) {
    %c0_i32 = arith.constant 0 : i32
    %c0_i32_0 = arith.constant 0 : i32
    %c0_i32_1 = arith.constant 0 : i32
    return %c0_i32, %c0_i32_0 : i32, i32
  }
  func.func @transform_7(%arg0: i32, %arg1: i32) -> (i32, i32, i32) {
    %c0_i32 = arith.constant 0 : i32
    %c0_i32_0 = arith.constant 0 : i32
    %c0_i32_1 = arith.constant 0 : i32
    return %arg0, %c0_i32, %c0_i32_0 : i32, i32, i32
  }
}

</mosaic_0001>

<bundles_post_ra>
// kernel: tpu_custom_call.1
= control target key start
LH: loop header
LB: loop body
LE: loop exit
PB: predicated region body
PF: predicated region fallthrough
CT: control target
= control target key end

     0   :  { %12 = vsyncpa [#allocation4], 0  ;;  %s1220_s0 = inlined_call_operand.vmem [shape: f32[2,8,32], index: 0, kind: input, shape index: {}]   ;;  %s1221_s1 = inlined_call_operand.vmem [shape: bf16[4,32,24], index: 1, kind: input, shape index: {}]   ;;  %s1222_s2 = inlined_call_operand.vmem [shape: f32[4,1,24], index: 2, kind: input, shape index: {}]   ;;  %s1223_s3 = inlined_call_operand.vmem [shape: bf16[4,8,32], index: 3, kind: input, shape index: {}]   ;;  %s1224_s4 = inlined_call_operand.vmem [shape: f32[1,32], index: 4, kind: input, shape index: {}]   ;;  %s1225_s5 = inlined_call_operand.vmem [shape: f32[1,32], index: 5, kind: input, shape index: {}]   ;;  %s1226_s6 = inlined_call_operand.vmem [shape: f32[1,32], index: 6, kind: input, shape index: {}]   ;;  %s1227_s7 = inlined_call_operand.hbm [shape: f32[2,8,32], index: 7, kind: output, shape index: {}]  }
   0x1   :  { %14 = vsyncpa [#allocation4 + $0x1], 0  ;;  %s1033_s24 = smov 0   ;;  %s1035_s25 = smov 0  }
   0x2   :  { %s1037_s26 = smov 0   ;;  %s1039_s27 = smov 0  }
   0x3   :  { %s1041_s28 = smov 0   ;;  %s1043_s29 = smov 0  }
   0x4   :  { %s1045_s30 = smov 0   ;;  %s1047_s8 = smov 0  }
   0x5 LB: > { %1235 = sst [smem:[#allocation6_spill]] %s957_s24  ;;  %s745_s9 = sadd.s32 4294967295, %s985_s8   ;;  %s985_s8 = sphi %s1047_s8, %s20_s8   ;;  %s981_s30 = sphi %s1045_s30, %s1253_s30   ;;  %s977_s29 = sphi %s1043_s29, %s1252_s29   ;;  %s973_s28 = sphi %s1041_s28, %s1251_s28   ;;  %s969_s27 = sphi %s1039_s27, %s1250_s27   ;;  %s965_s26 = sphi %s1037_s26, %s1249_s26   ;;  %s961_s25 = sphi %s1035_s25, %s1255_s25   ;;  %s957_s24 = sphi %s1033_s24, %s1254_s24  }
   0x6   : > { %1236 = sst [smem:[#allocation7_spill]] %s965_s26  ;;  %s746_s10 = sadd.s32 4294967294, %s985_s8  }
   0x7   : > { %1237 = sst [smem:[#allocation8_spill]] %s977_s29  ;;  %s29_s11 = sadd.s32 1, %s977_s29 }
   0x8   : > { %1238 = sst [smem:[#allocation9_spill]] %s981_s30  ;;  %p30_p0 = scmp.ge.s32.totalorder %s29_s11, 4 }
   0x9   : > { %s32_s12 = sadd.s32 1, %s981_s30  ;;  %p216_p1 = scmp.ne.s32.totalorder %s965_s26, %s961_s25 }
   0xa   : > { %p217_p2 = scmp.eq.s32.totalorder %s745_s9, 7  ;;  %s1257_s11 = smov (%p30_p0, %s29_s11), 0 }
   0xb   : > { %1239 = sst [smem:[#allocation10_spill]] %s1257_s11  ;;  %s1259_s12 = smov (!%p30_p0, %s32_s12), %s981_s30 }
   0xc   : > { %p1082_p3 = por %p217_p2, %p216_p1  ;;  %p222_p4 = scmp.ne.s32.totalorder %s961_s25, %s957_s24 }
   0xd   : > { %p34_p5 = scmp.ge.s32.totalorder %s1259_s12, 2  ;;  %p223_p6 = scmp.eq.s32.totalorder %s746_s10, 7 }
   0xe   : > { %p749_p7 = scmp.ge.s32.totalorder %s985_s8, 1  ;;  %p278_p8 = scmp.lt.s32.totalorder %s985_s8, 9 }
   0xf   : > { %s1261_s12 = smov (%p34_p5, %s1259_s12), 0  ;;  %p1092_p9 = por %p223_p6, %p222_p4 }
  0x10   : > { %1241 = sst [smem:[#allocation11_spill]] %s1261_s12  ;;  %p279_p10 = pnand %p749_p7, %p278_p8 }
  0x11   : > { %s1242_s14 = scalar_select %p1092_p9, 1, 0 }
  0x12   : > { %s203_s15 = ssub.s32 %s981_s30, %s1261_s12  ;;  %s206_s16 = sadd.s32 1, %s965_s26 }
  0x13   : > { %1243 = sst [smem:[#allocation12_spill]] %s1242_s14  ;;  %p204_p11 = scmp.eq.s32.totalorder %s203_s15, 0 }
  0x14   : > { %282 = sbr.rel (%p279_p10) target bundleno = 1697 (0x6a1), region = 48  ;;  %s1229_s18 = sand.u32 (!%p279_p10), 1, %s961_s25  }
  0x15   : > { %s1100_s17 = scalar_select %p204_p11, %s965_s26, %s206_s16  }
  0x16   : > { %p321_p12 = scmp.lt.s32.totalorder (!%p279_p10), %s973_s28, 1  ;;  %s1106_s19 = sshll.u32 (!%p279_p10), %s1229_s18, 3 }
  0x17   : > { %1244 = sst [smem:[#allocation13_spill]] %s1100_s17  ;;  %p325_p13 = scmp.lt.s32.totalorder (!%p279_p10), %s969_s27, 3 }
  0x18   : > { %p755_p0 = scmp.ne.s32.totalorder (!%p279_p10), %s969_s27, 0 }
  0x1b   : > { %s322_s20 = scalar_select %p321_p12, %s973_s28, 1 }
  0x1c   : > { %s1111_s21 = scalar_select %p325_p13, %s969_s27, 3 }
  0x1d   : > { %s751_s22 = sshll.u32 %s322_s20, 3  ;;  %s320_s20 = scalar_lea.vmem [#allocation3], %s1106_s19  ;;  %vm342_vm0 = vcmask (!%p755_p0), 261120   ;;  %v987_v0 = vmov (!%p755_p0), 0.0  }
  0x1e   : > { %s324_s10 = scalar_lea.vmem %s1220_s0, %s751_s22  ;;  %s771_s15 = sshll.u32 %s1111_s21, 4  ;;  %343 = vst.msk [vmem:[#allocation2] sm:$0xff] (!%p755_p0), %vm342_vm0, %v987_v0 }
  0x1f   : > { %s329_s11 = scalar_lea.vmem %s1221_s1, %s771_s15  ;;  %s332_s29 = scalar_lea.vmem %s1222_s2, %s1111_s21 }
  0x20   : > { %s754_s17 = sshll.u32 %s1111_s21, 2  ;;  %341 = sbr.rel (%p755_p0) target bundleno = 39 (0x27), region = 52 }
  0x21   : > { %s1128_s24 = scalar_lea.vmem %s1223_s3, %s754_s17 }
  0x27 PF: > { %v883_v1 = vld [vmem:[%s329_s11] sm:$0xff]   ;;  %v988_v2 = vmov 0.0   ;;  %v884_v3 = vld [vmem:[%s329_s11 + $0x8] sm:$0xff]   ;;  %vm989_vm1 = vmmov 0   ;;  %vm369_vm2 = vcmask 261120   ;;  %s990_s26 = smov 120   ;;  %v465_v15 = vlaneseq }
  0x28   : > { %781 = vmatprep.subr.bf16.mxu0 %v988_v2  ;;  %789 = vmatprep.subr.bf16.mxu1 %v988_v2  ;;  %v1133_v4 = vld [vmem:[%s324_s10] sm:$0xff]  ;;  %vm417_vm3 = vcmask 64512   ;;  %vm488_vm5 = vcmask 1043456   ;;  %p763_p1 = scmp.ne.s32.totalorder %s969_s27, 3 }
  0x29   : > { %782 = vmatpush3.bf16.msra.mxu0 %v883_v1  ;;  %785 = vmatprep.mubr.msk.bf16.mxu0 %vm989_vm1, %v988_v2  ;;  %v345_v5 = vpack.c.bf16 %v1133_v4, %v1133_v4  ;;  %v756_v6 = vld [vmem:[%s332_s29] ss:$0 sm:$0xff]  ;;  %v466_v16 = vshrl.u32 %v465_v15, 7  ;;  %v468_v17 = vand.u32 127, %v465_v15  ;;  %s991_s29 = smov 112  }
  0x2a   : > { %783 = vmatprep.subr.bf16.mxu0 %v988_v2  ;;  %791 = vmatprep.mubr.msk.bf16.mxu1 %vm989_vm1, %v988_v2  ;;  %v534_v30 = vld [vmem:[%s1128_s24] sm:$0xf] }
  0x2b   : > { %vm469_vm4 = vcmp.le.s32.totalorder %v468_v17, %v466_v16  ;;  %v539_v31 = vsel %vm488_vm5, %v534_v30, 0  ;;  %v532_v43 = vld [vmem:[#allocation2] sm:$0xff] }
  0x2c   : > { %v764_v50 = vld [vmem:[%s1224_s4] ss:$0 sm:$0xff] (!%p763_p1) }
  0x2d   : > { %784 = vmatpush3.bf16.msra.mxu0 %v884_v3  ;;  %v765_v63 = vld [vmem:[%s1225_s5] ss:$0 sm:$0xff] (!%p763_p1) }
  0x2e   : > { %795 = vmatprep.subr.bf16.mxu0 %v988_v2  ;;  %v766_v1 = vld [vmem:[%s1226_s6] ss:$0 sm:$0xff] (!%p763_p1) }
  0x30   : > { %786 = vmatmul.mubr.msk.bf16.vlgmr.msra.gmra.mrb[0].mxu0 %vm369_vm2, %v345_v5 }
  0x31   : > { %797 = vmatprep.mubr.msk.bf16.mxu0 %vm989_vm1, %v988_v2 }
 0x103   : > { %v407_v7 = vpop.f32.mrb[0].mxu0 }
 0x104   : > { %v408_v8 = vadd.f32 %v756_v6, %v407_v7  ;;  %v787_v9 = vpop.f32.mrb[1].mxu0 }
 0x105   : > { %v410_v10 = vpop.f32.mrb[2].mxu0 }
 0x106   : > { %v413_v11 = vpack.c.bf16 %v408_v8, %v408_v8  ;;  %v788_v12 = vpop.f32.mrb[3].mxu0 }
 0x108   : > { %415 = vrot.lane.b32.xlu0 %v413_v11, %s990_s26 }
 0x17a   : > { %v416_v13 = vpop.permute.xlu0 %415 }
 0x17b   : > { %v422_v14 = vsel %vm417_vm3, %v416_v13, 0 }
 0x17c   : > { %790 = vmatpush3.bf16.xpose.msra.mxu1 %v422_v14 }
 0x17d   : > { %801 = vmatprep.subr.bf16.mxu1 %v988_v2 }
 0x183   : > { %792 = vmatmul.mubr.msk.bf16.vlgmr.msra.gmra.mrb[0].mxu1 %vm417_vm3, %v413_v11 }
 0x184   : > { %803 = vmatprep.mubr.msk.bf16.mxu1 %vm989_vm1, %v988_v2  ;;  %802 = vmatpush3.bf16.msra.mxu1 %v539_v31 }
 0x256   : > { %v458_v18 = vpop.f32.mrb[0].mxu1 }
 0x257   : > { %v464_v19 = vmul.f32 0.35355338, %v458_v18  ;;  %v793_v20 = vpop.f32.mrb[1].mxu1 }
 0x258   : > { %v461_v21 = vpop.f32.mrb[2].mxu1 }
 0x259   : > { %v794_v22 = vpop.f32.mrb[3].mxu1  ;;  %v470_v23 = vsel %vm469_vm4, %v464_v19, -inf }
 0x25a   : > { %v471_v24 = vsel %vm417_vm3, %v470_v23, -inf }
 0x25b   : > { %472 = vmax.xlane.f32.xlu0 %v471_v24 }
 0x2e8   : > { %v473_v25 = vpop.xlane.xlu0 %472 }
 0x2e9   : > { %v474_v26 = vsub.f32 %v470_v23, %v473_v25 }
 0x2eb   : > { %v475_v27 = vmul.f32 1.442695, %v474_v26 }
 0x2ed   : > { %885 = vpow2.f32 %v475_v27 }
 0x2f7   : > { %v886_v28 = vpop.eup %885 }
 0x2f8   : > { %v477_v29 = vsel %vm417_vm3, %v886_v28, 0.0 }
 0x2f9   : > { %478 = vadd.xlane.f32.xlu1 %v477_v29 }
 0x30a   : > { %483 = vrot.lane.b32.xlu1 %v413_v11, %s991_s29 }
 0x386   : > { %v479_v32 = vpop.xlane.xlu1 %478 }
 0x387   : > { %887 = vrcp.f32 %v479_v32 }
 0x38a   : > { %v484_v33 = vpop.permute.xlu1 %483 }
 0x38b   : > { %v490_v34 = vsel %vm488_vm5, %v484_v33, 0 }
 0x38c   : > { %796 = vmatpush3.bf16.msra.mxu0 %v490_v34 }
 0x391   : > { %v888_v35 = vpop.eup %887 }
 0x392   : > { %v481_v36 = vmul.f32 %v888_v35, %v886_v28 }
 0x394   : > { %v482_v37 = vpack.c.bf16 %v481_v36, %v481_v36 }
 0x396   : > { %798 = vmatmul.mubr.msk.bf16.vlgmr.msra.gmra.mrb[4].mxu0 %vm417_vm3, %v482_v37 }
 0x469   : > { %v526_v38 = vpop.f32.mrb[4].mxu0 }
 0x46a   : > { %v533_v39 = vpack.c.bf16 %v526_v38, %v526_v38  ;;  %v799_v40 = vpop.f32.mrb[5].mxu0 }
 0x46b   : > { %v529_v41 = vpop.f32.mrb[6].mxu0 }
 0x46c   : > { %v800_v42 = vpop.f32.mrb[7].mxu0  ;;  %804 = vmatmul.mubr.msk.bf16.vlgmr.msra.gmra.mrb[4].mxu1 %vm417_vm3, %v533_v39 }
 0x53c   : > { %586 = sbr.rel (%p763_p1) target bundleno = 1672 (0x688), region = 56 }
 0x53f   : > { %v575_v44 = vpop.f32.mrb[4].mxu1 }
 0x540   : > { %v581_v45 = vadd.f32 %v575_v44, %v532_v43  ;;  %v805_v46 = vpop.f32.mrb[5].mxu1 }
 0x541   : > { %v578_v47 = vpop.f32.mrb[6].mxu1 }
 0x542   : > { %582 = vst.msk [vmem:[#allocation2] sm:$0xff] %vm369_vm2, %v581_v45  ;;  %v806_v48 = vpop.f32.mrb[7].mxu1 }
 0x549   : > { %v587_v49 = vld [vmem:[#allocation2] sm:$0xff] }
 0x54a   : > { %v595_v51 = vadd.f32 %v764_v50, %v587_v49 }
 0x54c   : > { %v596_v52 = vadd.f32 %v595_v51, %v1133_v4 }
 0x54e   : > { %v599_v53 = vsel %vm369_vm2, %v596_v52, 0.0 }
 0x54f   : > { %600 = vadd.xlane.f32.xlu0 %v599_v53 }
 0x5dc   : > { %v601_v54 = vpop.xlane.xlu0 %600 }
 0x5dd   : > { %v603_v55 = vmul.f32 0.03125, %v601_v54 }
 0x5df   : > { %v604_v56 = vsub.f32 %v596_v52, %v603_v55 }
 0x5e1   : > { %v605_v57 = vmul.f32 %v604_v56, %v604_v56 }
 0x5e3   : > { %v606_v58 = vsel %vm369_vm2, %v605_v57, 0.0 }
 0x5e4   : > { %607 = vadd.xlane.f32.xlu0 %v606_v58 }
 0x671   : > { %v608_v59 = vpop.xlane.xlu0 %607 }
 0x672   : > { %v609_v60 = vmul.f32 0.03125, %v608_v59 }
 0x674   : > { %v610_v61 = vadd.f32 1e-05, %v609_v60 }
 0x676   : > { %889 = vrsqrt.f32 %v610_v61 }
 0x680   : > { %v890_v62 = vpop.eup %889 }
 0x681   : > { %v612_v0 = vmul.f32 %v890_v62, %v604_v56 }
 0x683   : > { %v619_v2 = vmul.f32 %v765_v63, %v612_v0 }
 0x685   : > { %v626_v3 = vadd.f32 %v766_v1, %v619_v2 }
 0x687   : > { %627 = vst.msk [vmem:[%s320_s20] sm:$0xff] %vm369_vm2, %v626_v3 }
 0x688 PF: > { %s768_s17 = sshll.u32 %s973_s28, 7  ;;  %s642_s23 = sshll.u32 %s320_s20, 4  ;;  %s643_s23 = int_to_ptr.vmem [resolvable:$true] %s642_s23 }
 0x689   : > { %s1169_s22 = scalar_lea.hbm %s1227_s7, %s768_s17  ;;  %s1245_s9 = sand.u32 1, %s961_s25  }
 0x68a   : > { %s629_s10 = scalar_lea.sflag [#allocation4], %s1245_s9  ;;  %s891_s15 = scalar_lea.vmem %s643_s23, 128 }
 0x68b   : > { %p892_p2 = scmp.ne.s32.totalorder %s643_s23, %s891_s15  ;;  %s992_s16 = smov [#allocation3]  }
 0x68c   : > { %s895_s26 = sshll.u32 %s992_s16, 4  ;;  %s896_s26 = int_to_ptr.vmem [resolvable:$false] %s895_s26 }
 0x68d   : > { %p893_p4 = pnand %p892_p2, %p1082_p3  ;;  %s897_s29 = scalar_lea.vmem %s896_s26, 256 }
 0x68e   : > { %p898_p6 = scmp.lt.s32.totalorder %s643_s23, %s896_s26  ;;  %p899_p7 = scmp.lt.s32.totalorder %s897_s29, %s891_s15 }
 0x68f   : > { %p894_p5 = pneg %p893_p4 }
 0x690   : > { %p900_p8 = por %p899_p7, %p898_p6 }
 0x692   : > { %p901_p10 = pnand %p900_p8, %p894_p5 }
 0x694   : > { %904 = shalt.err (!%p901_p10)
}
 0x695   : > { %s905_s28 = scalar_lea.hbm %s1169_s22, 128  ;;  %s909_s24 = scalar_lea.hbm %s1227_s7, 256 }
 0x696   : > { %p906_p11 = scmp.ne.s32.totalorder %s1169_s22, %s905_s28  ;;  %p910_p0 = scmp.lt.u32.totalorder %s1169_s22, %s1227_s7 }
 0x697   : > { %p911_p1 = scmp.lt.u32.totalorder %s909_s24, %s905_s28  ;;  %p913_p4 = scmp.lt.u32.totalorder %s905_s28, %s1169_s22 }
 0x698   : > { %p907_p12 = pnand %p906_p11, %p1082_p3 }
 0x699   : > { %p912_p2 = por %p911_p1, %p910_p0 }
 0x69a   : > { %p908_p13 = pneg %p907_p12 }
 0x69b   : > { %p914_p5 = por %p913_p4, %p912_p2 }
 0x69d   : > { %p915_p6 = pnand %p914_p5, %p908_p13 }
 0x69f   : > { %918 = shalt.err (!%p915_p6)
}
 0x6a0   : > { %807 = dma.vmem_to_hbm [thread:$0]  (%p1082_p3), %s643_s23, 128, %s1169_s22, %s629_s10  }
 0x6a1 PF: > { %s1246_s11 = sld [smem:[#allocation6_spill]]  ;;  %p813_p7 = scmp.ge.s32.totalorder %s985_s8, 2 }
 0x6a3   : > { %p810_p8 = pnand %p813_p7, %p1092_p9 }
 0x6a7   : > { %s654_s14 = sand.u32 1, %s1246_s11  }
 0x6a8   : > { %s655_s17 = scalar_lea.sflag [#allocation4], %s654_s14 }
 0x6a9   : > { %952 = dma.done.wait (!%p810_p8), %s655_s17, 128  }
 0x6aa   : > { %954 = vsyncadd (!%p810_p8), %s655_s17, 4294967168  ;;  %s20_s8 = sadd.s32 1, %s985_s8   ;;  %s1248_s18 = sld [smem:[#allocation7_spill]] }
 0x6ab   : > { %p17_p10 = scmp.ge.s32.totalorder %s20_s8, 10   ;;  %s1249_s26 = sld [smem:[#allocation13_spill]] }
 0x6ac   : > { %s1250_s27 = sld [smem:[#allocation8_spill]]  ;;  %s1251_s28 = sld [smem:[#allocation9_spill]] }
 0x6ad   : > { %s1252_s29 = sld [smem:[#allocation10_spill]]  ;;  %s1253_s30 = sld [smem:[#allocation11_spill]] }
 0x6ae   : > { %s1254_s24 = smov %s961_s25  ;;  %19 = sbr.rel (!%p17_p10) target bundleno = 5 (0x5), region = 100 }
 0x6b0   : > { %s1255_s25 = smov %s1248_s18 }
 0x6b5   :  { %660 = vsyncpa [#allocation4], 1 }
 0x6b6   :  { %662 = vsyncpa [#allocation4 + $0x1], 1 }

</bundles_post_ra>
